<compile_context>
chip_gen: v7x
topology: tpu7x:2x2x1
jax: 0.10.0
libtpu: 0.0.40
codegen_flags: <defaults>
</compile_context>

<pallas_src>
import functools

import jax
import jax.numpy as jnp
from jax.experimental import pallas as pl
from jax.experimental.pallas import tpu as pltpu


def attention1d_kernel(x_ref, wqkv_ref, wo_ref, bo_ref, o_ref, attn_ref, *,
                       heads, dim_head, scale):
    bt, n, d = x_ref.shape
    inner = heads * dim_head

    # (Bt, N, D) -> (Bt*N, D): merge leading (sublane) dims; lane dim unchanged.
    xf = x_ref[...].reshape(bt * n, d).astype(jnp.bfloat16)

    # Fused QKV projection for the whole batch tile (one big-M MXU matmul, f32 acc).
    qkv = jnp.dot(xf, wqkv_ref[...], preferred_element_type=jnp.float32)  # (Bt*N, 3*inner)

    q_all = (qkv[:, 0 * inner:1 * inner] * scale).astype(jnp.bfloat16)    # scale folded into q
    k_all = qkv[:, 1 * inner:2 * inner].astype(jnp.bfloat16)
    v_all = qkv[:, 2 * inner:3 * inner].astype(jnp.bfloat16)

    # TODO(synk): optional additive `mask` (dots = dots + mask) not wired; it would be
    # one extra (heads, N, N)-broadcastable input added to `dots` below.
    row_outs = []
    for b in range(bt):                       # static unroll: bt, heads are trace-time ints
        r0 = b * n
        head_outs = []
        for h in range(heads):
            c0 = h * dim_head
            q_bh = q_all[r0:r0 + n, c0:c0 + dim_head]   # (N, dh) bf16
            k_bh = k_all[r0:r0 + n, c0:c0 + dim_head]
            v_bh = v_all[r0:r0 + n, c0:c0 + dim_head]

            # scores: contract the dh axis of both operands (no explicit k.T relayout).
            dots = jax.lax.dot_general(
                q_bh, k_bh, (((1,), (1,)), ((), ())),
                preferred_element_type=jnp.float32)      # (N, N) f32

            dots = dots - jnp.max(dots, axis=-1, keepdims=True)
            p = jnp.exp(dots)
            denom = jnp.sum(p, axis=-1, keepdims=True)
            attn = p * pl.reciprocal(denom, approx=True)  # softmax in f32, EUP recip

            attn_ref[b, h, :, :] = attn.astype(attn_ref.dtype)

            head_outs.append(
                jnp.dot(attn.astype(jnp.bfloat16), v_bh,
                        preferred_element_type=jnp.float32))   # (N, dh) f32
        row_outs.append(jnp.concatenate(head_outs, axis=-1))   # (N, inner)
    outf = jnp.concatenate(row_outs, axis=0)                   # (Bt*N, inner) f32

    # Output projection for the whole batch tile; bias added in f32.
    y = jnp.dot(outf.astype(jnp.bfloat16), wo_ref[...],
                preferred_element_type=jnp.float32) + bo_ref[...]
    o_ref[...] = y.reshape(bt, n, -1).astype(o_ref.dtype)


def _pick_batch_tile(batch, seq, target_rows=128):
    """Smallest divisor of `batch` giving >= target_rows matmul rows per grid step
    (falls back to the full batch if none does). Keeps the grid as long as possible
    once the MXU M dimension is saturated (helps v7x megacore sharding)."""
    tile = batch
    for cand in range(1, batch + 1):
        if batch % cand == 0 and cand * seq >= target_rows:
            tile = cand
            break
    return tile


def attention1d_forward(x, params, *, heads, dim_head, batch_tile=None):
    B, N, D = x.shape
    inner = heads * dim_head
    dim_out = params["wo"].shape[1]
    scale = dim_head ** -0.5

    if batch_tile is None:
        batch_tile = _pick_batch_tile(B, N)
    assert B % batch_tile == 0, "batch_tile must divide batch"
    grid = (B // batch_tile,)

    # Cast MXU weights to bf16 once in the wrapper (halves weight DMA/VMEM);
    # bias stays f32 (added after f32 accumulation).
    wqkv = params["wqkv"].astype(jnp.bfloat16)
    wo = params["wo"].astype(jnp.bfloat16)
    bo = params["bo"].astype(jnp.float32)

    kernel = functools.partial(attention1d_kernel, heads=heads,
                               dim_head=dim_head, scale=scale)

    def const_spec(shape):
        return pl.BlockSpec(shape, lambda i: (0,) * len(shape))

    out, attn = pl.pallas_call(
        kernel,
        out_shape=(
            jax.ShapeDtypeStruct((B, N, dim_out), x.dtype),
            jax.ShapeDtypeStruct((B, heads, N, N), x.dtype),
        ),
        grid_spec=pltpu.PrefetchScalarGridSpec(
            num_scalar_prefetch=0,
            grid=grid,
            in_specs=[
                pl.BlockSpec((batch_tile, N, D), lambda i: (i, 0, 0)),   # x
                const_spec((D, 3 * inner)),                               # Wqkv (bf16)
                const_spec((inner, dim_out)),                             # Wo   (bf16)
                const_spec((1, dim_out)),                                 # bo   (f32)
            ],
            out_specs=[
                pl.BlockSpec((batch_tile, N, dim_out), lambda i: (i, 0, 0)),
                pl.BlockSpec((batch_tile, heads, N, N), lambda i: (i, 0, 0, 0)),
            ],
        ),
        compiler_params=pltpu.CompilerParams(
            dimension_semantics=("parallel",)),
    )(x, wqkv, wo, bo)
    return out, attn


def attention1d_reference(x, params, *, heads, dim_head):
    # Pure JAX (f32) mirror of the PyTorch Attention1d forward, for validation.
    B, N, D = x.shape
    inner = heads * dim_head
    scale = dim_head ** -0.5
    qkv = x @ params["wqkv"]
    q, k, v = jnp.split(qkv, 3, axis=-1)
    q = q.reshape(B, N, heads, dim_head).transpose(0, 2, 1, 3)
    k = k.reshape(B, N, heads, dim_head).transpose(0, 2, 1, 3)
    v = v.reshape(B, N, heads, dim_head).transpose(0, 2, 1, 3)
    dots = jnp.einsum('bhid,bhjd->bhij', q, k) * scale
    attn = jax.nn.softmax(dots, axis=-1)
    out = jnp.einsum('bhij,bhjd->bhid', attn, v)
    out = out.transpose(0, 2, 1, 3).reshape(B, N, inner)
    out = out @ params["wo"] + params["bo"][0]
    return out, attn


if __name__ == "__main__":
    # Small Attention1d config: dim_in = dim_out = 32, heads = 4, dim_head = 8
    # (inner_dim = 32), dropout = 0 -> Identity.  B = 2, N = 8.
    B, N = 2, 8
    dim_in = 32
    heads, dim_head = 4, 8
    inner = heads * dim_head
    dim_out = dim_in

    key = jax.random.PRNGKey(0)
    k_x, k_qkv, k_o, k_b = jax.random.split(key, 4)

    x = jax.random.normal(k_x, (B, N, dim_in), dtype=jnp.float32)
    params = {
        # Linear weights stored pre-transposed as (in, out): y = x @ W + b.
        # (PyTorch nn.Linear stores (out, in); pass weight.T for parity.)
        "wqkv": 0.05 * jax.random.normal(k_qkv, (dim_in, 3 * inner), jnp.float32),
        "wo":   0.05 * jax.random.normal(k_o, (inner, dim_out), jnp.float32),
        "bo":   0.01 * jax.random.normal(k_b, (1, dim_out), jnp.float32),
    }

    out, attn = attention1d_forward(x, params, heads=heads, dim_head=dim_head)
    out, attn = jax.block_until_ready((out, attn))

    ref_out, ref_attn = attention1d_reference(x, params, heads=heads, dim_head=dim_head)

    assert out.shape == (B, N, dim_out)
    assert attn.shape == (B, heads, N, N)
    # bf16 MXU inputs + approx reciprocal -> loosened tolerance vs the f32 reference.
    assert jnp.allclose(out, ref_out, atol=2e-2, rtol=2e-2), "out mismatch vs reference"
    assert jnp.allclose(attn, ref_attn, atol=2e-2, rtol=2e-2), "attn mismatch vs reference"

    print("KERNEL_OK")
</pallas_src>

<mosaic_0001>
module attributes {stable_mosaic.version = 11 : i64} {
  func.func @attention1d_kernel(%arg0: i32, %arg1: memref<2x8x32xf32, #tpu.memory_space<vmem>>, %arg2: memref<32x96xbf16, #tpu.memory_space<vmem>>, %arg3: memref<32x32xbf16, #tpu.memory_space<vmem>>, %arg4: memref<1x32xf32, #tpu.memory_space<vmem>>, %arg5: memref<2x8x32xf32, #tpu.memory_space<vmem>>, %arg6: memref<2x4x8x8xf32, #tpu.memory_space<vmem>>) attributes {dimension_semantics = [#tpu.dimension_semantics<parallel>], iteration_bounds = array<i64: 1>, scalar_prefetch = 0 : i64, scratch_operands = 0 : i64, tpu.core_type = #tpu.core_type<tc>, window_params = [{transform_indices = @transform_0, window_bounds = array<i64: 2, 8, 32>}, {pipeline_mode = #tpu.pipeline_mode<synchronous>, transform_indices = @transform_1, window_bounds = array<i64: 32, 96>}, {pipeline_mode = #tpu.pipeline_mode<synchronous>, transform_indices = @transform_2, window_bounds = array<i64: 32, 32>}, {pipeline_mode = #tpu.pipeline_mode<synchronous>, transform_indices = @transform_3, window_bounds = array<i64: 1, 32>}, {transform_indices = @transform_4, window_bounds = array<i64: 2, 8, 32>}, {transform_indices = @transform_5, window_bounds = array<i64: 2, 4, 8, 8>}]} {
    %c0 = arith.constant 0 : index
    %c0_0 = arith.constant 0 : index
    %c0_1 = arith.constant 0 : index
    %0 = vector.load %arg1[%c0, %c0_0, %c0_1] : memref<2x8x32xf32, #tpu.memory_space<vmem>>, vector<2x8x32xf32>
    %1 = vector.shape_cast %0 : vector<2x8x32xf32> to vector<16x32xf32>
    %2 = arith.truncf %1 : vector<16x32xf32> to vector<16x32xbf16>
    %c0_2 = arith.constant 0 : index
    %c0_3 = arith.constant 0 : index
    %3 = vector.load %arg2[%c0_2, %c0_3] : memref<32x96xbf16, #tpu.memory_space<vmem>>, vector<32x96xbf16>
    %cst = arith.constant dense<0.000000e+00> : vector<16x96xf32>
    %4 = tpu.matmul %2, %3, %cst {dimension_numbers = #tpu.dot_dimension_numbers<[1], [0], [0], [1], [0, 0, 1, 1], [], []>} : vector<16x32xbf16>, vector<32x96xbf16>, vector<16x96xf32> -> vector<16x96xf32>
    %5 = vector.extract_strided_slice %4 {offsets = [0, 0], sizes = [16, 32], strides = [1, 1]} : vector<16x96xf32> to vector<16x32xf32>
    %cst_4 = arith.constant 0.353553385 : f32
    %6 = vector.broadcast %cst_4 : f32 to vector<16x32xf32>
    %7 = arith.mulf %5, %6 : vector<16x32xf32>
    %8 = arith.truncf %7 : vector<16x32xf32> to vector<16x32xbf16>
    %9 = vector.extract_strided_slice %4 {offsets = [0, 32], sizes = [16, 32], strides = [1, 1]} : vector<16x96xf32> to vector<16x32xf32>
    %10 = arith.truncf %9 : vector<16x32xf32> to vector<16x32xbf16>
    %11 = vector.extract_strided_slice %4 {offsets = [0, 64], sizes = [16, 32], strides = [1, 1]} : vector<16x96xf32> to vector<16x32xf32>
    %12 = arith.truncf %11 : vector<16x32xf32> to vector<16x32xbf16>
    %13 = vector.extract_strided_slice %8 {offsets = [0, 0], sizes = [8, 8], strides = [1, 1]} : vector<16x32xbf16> to vector<8x8xbf16>
    %14 = vector.extract_strided_slice %10 {offsets = [0, 0], sizes = [8, 8], strides = [1, 1]} : vector<16x32xbf16> to vector<8x8xbf16>
    %15 = vector.extract_strided_slice %12 {offsets = [0, 0], sizes = [8, 8], strides = [1, 1]} : vector<16x32xbf16> to vector<8x8xbf16>
    %cst_5 = arith.constant dense<0.000000e+00> : vector<8x8xf32>
    %16 = tpu.matmul %13, %14, %cst_5 {dimension_numbers = #tpu.dot_dimension_numbers<[1], [1], [0], [0], [0, 0, 1, 0], [], []>} : vector<8x8xbf16>, vector<8x8xbf16>, vector<8x8xf32> -> vector<8x8xf32>
    %cst_6 = arith.constant dense<0xFF800000> : vector<8xf32>
    %17 = vector.multi_reduction <maximumf>, %16, %cst_6 [1] : vector<8x8xf32> to vector<8xf32>
    %18 = vector.shape_cast %17 : vector<8xf32> to vector<8x1xf32>
    %19 = vector.broadcast %18 : vector<8x1xf32> to vector<8x8xf32>
    %20 = arith.subf %16, %19 : vector<8x8xf32>
    %21 = math.exp %20 : vector<8x8xf32>
    %cst_7 = arith.constant dense<0.000000e+00> : vector<8xf32>
    %22 = vector.multi_reduction <add>, %21, %cst_7 [1] : vector<8x8xf32> to vector<8xf32>
    %23 = vector.shape_cast %22 : vector<8xf32> to vector<8x1xf32>
    %24 = tpu.reciprocal %23 {approx = true} : vector<8x1xf32> -> vector<8x1xf32>
    %25 = vector.broadcast %24 : vector<8x1xf32> to vector<8x8xf32>
    %26 = arith.mulf %21, %25 : vector<8x8xf32>
    %c0_8 = arith.constant 0 : index
    %c0_9 = arith.constant 0 : index
    %c0_10 = arith.constant 0 : index
    %c0_11 = arith.constant 0 : index
    %27 = vector.load %arg6[%c0_8, %c0_9, %c0_10, %c0_11] : memref<2x4x8x8xf32, #tpu.memory_space<vmem>>, vector<1x1x8x8xf32>
    %28 = vector.shape_cast %27 : vector<1x1x8x8xf32> to vector<8x8xf32>
    %29 = vector.shape_cast %26 : vector<8x8xf32> to vector<1x1x8x8xf32>
    tpu.vector_store %arg6[%c0_8, %c0_9, %c0_10, %c0_11], %29 {strides = array<i32>} : memref<2x4x8x8xf32, #tpu.memory_space<vmem>>, vector<1x1x8x8xf32>,
    %30 = arith.truncf %26 : vector<8x8xf32> to vector<8x8xbf16>
    %cst_12 = arith.constant dense<0.000000e+00> : vector<8x8xf32>
    %31 = tpu.matmul %30, %15, %cst_12 {dimension_numbers = #tpu.dot_dimension_numbers<[1], [0], [0], [1], [0, 0, 1, 1], [], []>} : vector<8x8xbf16>, vector<8x8xbf16>, vector<8x8xf32> -> vector<8x8xf32>
    %32 = vector.extract_strided_slice %8 {offsets = [0, 8], sizes = [8, 8], strides = [1, 1]} : vector<16x32xbf16> to vector<8x8xbf16>
    %33 = vector.extract_strided_slice %10 {offsets = [0, 8], sizes = [8, 8], strides = [1, 1]} : vector<16x32xbf16> to vector<8x8xbf16>
    %34 = vector.extract_strided_slice %12 {offsets = [0, 8], sizes = [8, 8], strides = [1, 1]} : vector<16x32xbf16> to vector<8x8xbf16>
    %cst_13 = arith.constant dense<0.000000e+00> : vector<8x8xf32>
    %35 = tpu.matmul %32, %33, %cst_13 {dimension_numbers = #tpu.dot_dimension_numbers<[1], [1], [0], [0], [0, 0, 1, 0], [], []>} : vector<8x8xbf16>, vector<8x8xbf16>, vector<8x8xf32> -> vector<8x8xf32>
    %cst_14 = arith.constant dense<0xFF800000> : vector<8xf32>
    %36 = vector.multi_reduction <maximumf>, %35, %cst_14 [1] : vector<8x8xf32> to vector<8xf32>
    %37 = vector.shape_cast %36 : vector<8xf32> to vector<8x1xf32>
    %38 = vector.broadcast %37 : vector<8x1xf32> to vector<8x8xf32>
    %39 = arith.subf %35, %38 : vector<8x8xf32>
    %40 = math.exp %39 : vector<8x8xf32>
    %cst_15 = arith.constant dense<0.000000e+00> : vector<8xf32>
    %41 = vector.multi_reduction <add>, %40, %cst_15 [1] : vector<8x8xf32> to vector<8xf32>
    %42 = vector.shape_cast %41 : vector<8xf32> to vector<8x1xf32>
    %43 = tpu.reciprocal %42 {approx = true} : vector<8x1xf32> -> vector<8x1xf32>
    %44 = vector.broadcast %43 : vector<8x1xf32> to vector<8x8xf32>
    %45 = arith.mulf %40, %44 : vector<8x8xf32>
    %c0_16 = arith.constant 0 : index
    %c1 = arith.constant 1 : index
    %c0_17 = arith.constant 0 : index
    %c0_18 = arith.constant 0 : index
    %46 = vector.load %arg6[%c0_16, %c1, %c0_17, %c0_18] : memref<2x4x8x8xf32, #tpu.memory_space<vmem>>, vector<1x1x8x8xf32>
    %47 = vector.shape_cast %46 : vector<1x1x8x8xf32> to vector<8x8xf32>
    %48 = vector.shape_cast %45 : vector<8x8xf32> to vector<1x1x8x8xf32>
    tpu.vector_store %arg6[%c0_16, %c1, %c0_17, %c0_18], %48 {strides = array<i32>} : memref<2x4x8x8xf32, #tpu.memory_space<vmem>>, vector<1x1x8x8xf32>,
    %49 = arith.truncf %45 : vector<8x8xf32> to vector<8x8xbf16>
    %cst_19 = arith.constant dense<0.000000e+00> : vector<8x8xf32>
    %50 = tpu.matmul %49, %34, %cst_19 {dimension_numbers = #tpu.dot_dimension_numbers<[1], [0], [0], [1], [0, 0, 1, 1], [], []>} : vector<8x8xbf16>, vector<8x8xbf16>, vector<8x8xf32> -> vector<8x8xf32>
    %51 = vector.extract_strided_slice %8 {offsets = [0, 16], sizes = [8, 8], strides = [1, 1]} : vector<16x32xbf16> to vector<8x8xbf16>
    %52 = vector.extract_strided_slice %10 {offsets = [0, 16], sizes = [8, 8], strides = [1, 1]} : vector<16x32xbf16> to vector<8x8xbf16>
    %53 = vector.extract_strided_slice %12 {offsets = [0, 16], sizes = [8, 8], strides = [1, 1]} : vector<16x32xbf16> to vector<8x8xbf16>
    %cst_20 = arith.constant dense<0.000000e+00> : vector<8x8xf32>
    %54 = tpu.matmul %51, %52, %cst_20 {dimension_numbers = #tpu.dot_dimension_numbers<[1], [1], [0], [0], [0, 0, 1, 0], [], []>} : vector<8x8xbf16>, vector<8x8xbf16>, vector<8x8xf32> -> vector<8x8xf32>
    %cst_21 = arith.constant dense<0xFF800000> : vector<8xf32>
    %55 = vector.multi_reduction <maximumf>, %54, %cst_21 [1] : vector<8x8xf32> to vector<8xf32>
    %56 = vector.shape_cast %55 : vector<8xf32> to vector<8x1xf32>
    %57 = vector.broadcast %56 : vector<8x1xf32> to vector<8x8xf32>
    %58 = arith.subf %54, %57 : vector<8x8xf32>
    %59 = math.exp %58 : vector<8x8xf32>
    %cst_22 = arith.constant dense<0.000000e+00> : vector<8xf32>
    %60 = vector.multi_reduction <add>, %59, %cst_22 [1] : vector<8x8xf32> to vector<8xf32>
    %61 = vector.shape_cast %60 : vector<8xf32> to vector<8x1xf32>
    %62 = tpu.reciprocal %61 {approx = true} : vector<8x1xf32> -> vector<8x1xf32>
    %63 = vector.broadcast %62 : vector<8x1xf32> to vector<8x8xf32>
    %64 = arith.mulf %59, %63 : vector<8x8xf32>
    %c0_23 = arith.constant 0 : index
    %c2 = arith.constant 2 : index
    %c0_24 = arith.constant 0 : index
    %c0_25 = arith.constant 0 : index
    %65 = vector.load %arg6[%c0_23, %c2, %c0_24, %c0_25] : memref<2x4x8x8xf32, #tpu.memory_space<vmem>>, vector<1x1x8x8xf32>
    %66 = vector.shape_cast %65 : vector<1x1x8x8xf32> to vector<8x8xf32>
    %67 = vector.shape_cast %64 : vector<8x8xf32> to vector<1x1x8x8xf32>
    tpu.vector_store %arg6[%c0_23, %c2, %c0_24, %c0_25], %67 {strides = array<i32>} : memref<2x4x8x8xf32, #tpu.memory_space<vmem>>, vector<1x1x8x8xf32>,
    %68 = arith.truncf %64 : vector<8x8xf32> to vector<8x8xbf16>
    %cst_26 = arith.constant dense<0.000000e+00> : vector<8x8xf32>
    %69 = tpu.matmul %68, %53, %cst_26 {dimension_numbers = #tpu.dot_dimension_numbers<[1], [0], [0], [1], [0, 0, 1, 1], [], []>} : vector<8x8xbf16>, vector<8x8xbf16>, vector<8x8xf32> -> vector<8x8xf32>
    %70 = vector.extract_strided_slice %8 {offsets = [0, 24], sizes = [8, 8], strides = [1, 1]} : vector<16x32xbf16> to vector<8x8xbf16>
    %71 = vector.extract_strided_slice %10 {offsets = [0, 24], sizes = [8, 8], strides = [1, 1]} : vector<16x32xbf16> to vector<8x8xbf16>
    %72 = vector.extract_strided_slice %12 {offsets = [0, 24], sizes = [8, 8], strides = [1, 1]} : vector<16x32xbf16> to vector<8x8xbf16>
    %cst_27 = arith.constant dense<0.000000e+00> : vector<8x8xf32>
    %73 = tpu.matmul %70, %71, %cst_27 {dimension_numbers = #tpu.dot_dimension_numbers<[1], [1], [0], [0], [0, 0, 1, 0], [], []>} : vector<8x8xbf16>, vector<8x8xbf16>, vector<8x8xf32> -> vector<8x8xf32>
    %cst_28 = arith.constant dense<0xFF800000> : vector<8xf32>
    %74 = vector.multi_reduction <maximumf>, %73, %cst_28 [1] : vector<8x8xf32> to vector<8xf32>
    %75 = vector.shape_cast %74 : vector<8xf32> to vector<8x1xf32>
    %76 = vector.broadcast %75 : vector<8x1xf32> to vector<8x8xf32>
    %77 = arith.subf %73, %76 : vector<8x8xf32>
    %78 = math.exp %77 : vector<8x8xf32>
    %cst_29 = arith.constant dense<0.000000e+00> : vector<8xf32>
    %79 = vector.multi_reduction <add>, %78, %cst_29 [1] : vector<8x8xf32> to vector<8xf32>
    %80 = vector.shape_cast %79 : vector<8xf32> to vector<8x1xf32>
    %81 = tpu.reciprocal %80 {approx = true} : vector<8x1xf32> -> vector<8x1xf32>
    %82 = vector.broadcast %81 : vector<8x1xf32> to vector<8x8xf32>
    %83 = arith.mulf %78, %82 : vector<8x8xf32>
    %c0_30 = arith.constant 0 : index
    %c3 = arith.constant 3 : index
    %c0_31 = arith.constant 0 : index
    %c0_32 = arith.constant 0 : index
    %84 = vector.load %arg6[%c0_30, %c3, %c0_31, %c0_32] : memref<2x4x8x8xf32, #tpu.memory_space<vmem>>, vector<1x1x8x8xf32>
    %85 = vector.shape_cast %84 : vector<1x1x8x8xf32> to vector<8x8xf32>
    %86 = vector.shape_cast %83 : vector<8x8xf32> to vector<1x1x8x8xf32>
    tpu.vector_store %arg6[%c0_30, %c3, %c0_31, %c0_32], %86 {strides = array<i32>} : memref<2x4x8x8xf32, #tpu.memory_space<vmem>>, vector<1x1x8x8xf32>,
    %87 = arith.truncf %83 : vector<8x8xf32> to vector<8x8xbf16>
    %cst_33 = arith.constant dense<0.000000e+00> : vector<8x8xf32>
    %88 = tpu.matmul %87, %72, %cst_33 {dimension_numbers = #tpu.dot_dimension_numbers<[1], [0], [0], [1], [0, 0, 1, 1], [], []>} : vector<8x8xbf16>, vector<8x8xbf16>, vector<8x8xf32> -> vector<8x8xf32>
    %89 = tpu.concatenate %31, %50, %69, %88 in 1 : vector<8x8xf32>, vector<8x8xf32>, vector<8x8xf32>, vector<8x8xf32> -> vector<8x32xf32>
    %90 = vector.extract_strided_slice %8 {offsets = [8, 0], sizes = [8, 8], strides = [1, 1]} : vector<16x32xbf16> to vector<8x8xbf16>
    %91 = vector.extract_strided_slice %10 {offsets = [8, 0], sizes = [8, 8], strides = [1, 1]} : vector<16x32xbf16> to vector<8x8xbf16>
    %92 = vector.extract_strided_slice %12 {offsets = [8, 0], sizes = [8, 8], strides = [1, 1]} : vector<16x32xbf16> to vector<8x8xbf16>
    %cst_34 = arith.constant dense<0.000000e+00> : vector<8x8xf32>
    %93 = tpu.matmul %90, %91, %cst_34 {dimension_numbers = #tpu.dot_dimension_numbers<[1], [1], [0], [0], [0, 0, 1, 0], [], []>} : vector<8x8xbf16>, vector<8x8xbf16>, vector<8x8xf32> -> vector<8x8xf32>
    %cst_35 = arith.constant dense<0xFF800000> : vector<8xf32>
    %94 = vector.multi_reduction <maximumf>, %93, %cst_35 [1] : vector<8x8xf32> to vector<8xf32>
    %95 = vector.shape_cast %94 : vector<8xf32> to vector<8x1xf32>
    %96 = vector.broadcast %95 : vector<8x1xf32> to vector<8x8xf32>
    %97 = arith.subf %93, %96 : vector<8x8xf32>
    %98 = math.exp %97 : vector<8x8xf32>
    %cst_36 = arith.constant dense<0.000000e+00> : vector<8xf32>
    %99 = vector.multi_reduction <add>, %98, %cst_36 [1] : vector<8x8xf32> to vector<8xf32>
    %100 = vector.shape_cast %99 : vector<8xf32> to vector<8x1xf32>
    %101 = tpu.reciprocal %100 {approx = true} : vector<8x1xf32> -> vector<8x1xf32>
    %102 = vector.broadcast %101 : vector<8x1xf32> to vector<8x8xf32>
    %103 = arith.mulf %98, %102 : vector<8x8xf32>
    %c1_37 = arith.constant 1 : index
    %c0_38 = arith.constant 0 : index
    %c0_39 = arith.constant 0 : index
    %c0_40 = arith.constant 0 : index
    %104 = vector.load %arg6[%c1_37, %c0_38, %c0_39, %c0_40] : memref<2x4x8x8xf32, #tpu.memory_space<vmem>>, vector<1x1x8x8xf32>
    %105 = vector.shape_cast %104 : vector<1x1x8x8xf32> to vector<8x8xf32>
    %106 = vector.shape_cast %103 : vector<8x8xf32> to vector<1x1x8x8xf32>
    tpu.vector_store %arg6[%c1_37, %c0_38, %c0_39, %c0_40], %106 {strides = array<i32>} : memref<2x4x8x8xf32, #tpu.memory_space<vmem>>, vector<1x1x8x8xf32>,
    %107 = arith.truncf %103 : vector<8x8xf32> to vector<8x8xbf16>
    %cst_41 = arith.constant dense<0.000000e+00> : vector<8x8xf32>
    %108 = tpu.matmul %107, %92, %cst_41 {dimension_numbers = #tpu.dot_dimension_numbers<[1], [0], [0], [1], [0, 0, 1, 1], [], []>} : vector<8x8xbf16>, vector<8x8xbf16>, vector<8x8xf32> -> vector<8x8xf32>
    %109 = vector.extract_strided_slice %8 {offsets = [8, 8], sizes = [8, 8], strides = [1, 1]} : vector<16x32xbf16> to vector<8x8xbf16>
    %110 = vector.extract_strided_slice %10 {offsets = [8, 8], sizes = [8, 8], strides = [1, 1]} : vector<16x32xbf16> to vector<8x8xbf16>
    %111 = vector.extract_strided_slice %12 {offsets = [8, 8], sizes = [8, 8], strides = [1, 1]} : vector<16x32xbf16> to vector<8x8xbf16>
    %cst_42 = arith.constant dense<0.000000e+00> : vector<8x8xf32>
    %112 = tpu.matmul %109, %110, %cst_42 {dimension_numbers = #tpu.dot_dimension_numbers<[1], [1], [0], [0], [0, 0, 1, 0], [], []>} : vector<8x8xbf16>, vector<8x8xbf16>, vector<8x8xf32> -> vector<8x8xf32>
    %cst_43 = arith.constant dense<0xFF800000> : vector<8xf32>
    %113 = vector.multi_reduction <maximumf>, %112, %cst_43 [1] : vector<8x8xf32> to vector<8xf32>
    %114 = vector.shape_cast %113 : vector<8xf32> to vector<8x1xf32>
    %115 = vector.broadcast %114 : vector<8x1xf32> to vector<8x8xf32>
    %116 = arith.subf %112, %115 : vector<8x8xf32>
    %117 = math.exp %116 : vector<8x8xf32>
    %cst_44 = arith.constant dense<0.000000e+00> : vector<8xf32>
    %118 = vector.multi_reduction <add>, %117, %cst_44 [1] : vector<8x8xf32> to vector<8xf32>
    %119 = vector.shape_cast %118 : vector<8xf32> to vector<8x1xf32>
    %120 = tpu.reciprocal %119 {approx = true} : vector<8x1xf32> -> vector<8x1xf32>
    %121 = vector.broadcast %120 : vector<8x1xf32> to vector<8x8xf32>
    %122 = arith.mulf %117, %121 : vector<8x8xf32>
    %c1_45 = arith.constant 1 : index
    %c1_46 = arith.constant 1 : index
    %c0_47 = arith.constant 0 : index
    %c0_48 = arith.constant 0 : index
    %123 = vector.load %arg6[%c1_45, %c1_46, %c0_47, %c0_48] : memref<2x4x8x8xf32, #tpu.memory_space<vmem>>, vector<1x1x8x8xf32>
    %124 = vector.shape_cast %123 : vector<1x1x8x8xf32> to vector<8x8xf32>
    %125 = vector.shape_cast %122 : vector<8x8xf32> to vector<1x1x8x8xf32>
    tpu.vector_store %arg6[%c1_45, %c1_46, %c0_47, %c0_48], %125 {strides = array<i32>} : memref<2x4x8x8xf32, #tpu.memory_space<vmem>>, vector<1x1x8x8xf32>,
    %126 = arith.truncf %122 : vector<8x8xf32> to vector<8x8xbf16>
    %cst_49 = arith.constant dense<0.000000e+00> : vector<8x8xf32>
    %127 = tpu.matmul %126, %111, %cst_49 {dimension_numbers = #tpu.dot_dimension_numbers<[1], [0], [0], [1], [0, 0, 1, 1], [], []>} : vector<8x8xbf16>, vector<8x8xbf16>, vector<8x8xf32> -> vector<8x8xf32>
    %128 = vector.extract_strided_slice %8 {offsets = [8, 16], sizes = [8, 8], strides = [1, 1]} : vector<16x32xbf16> to vector<8x8xbf16>
    %129 = vector.extract_strided_slice %10 {offsets = [8, 16], sizes = [8, 8], strides = [1, 1]} : vector<16x32xbf16> to vector<8x8xbf16>
    %130 = vector.extract_strided_slice %12 {offsets = [8, 16], sizes = [8, 8], strides = [1, 1]} : vector<16x32xbf16> to vector<8x8xbf16>
    %cst_50 = arith.constant dense<0.000000e+00> : vector<8x8xf32>
    %131 = tpu.matmul %128, %129, %cst_50 {dimension_numbers = #tpu.dot_dimension_numbers<[1], [1], [0], [0], [0, 0, 1, 0], [], []>} : vector<8x8xbf16>, vector<8x8xbf16>, vector<8x8xf32> -> vector<8x8xf32>
    %cst_51 = arith.constant dense<0xFF800000> : vector<8xf32>
    %132 = vector.multi_reduction <maximumf>, %131, %cst_51 [1] : vector<8x8xf32> to vector<8xf32>
    %133 = vector.shape_cast %132 : vector<8xf32> to vector<8x1xf32>
    %134 = vector.broadcast %133 : vector<8x1xf32> to vector<8x8xf32>
    %135 = arith.subf %131, %134 : vector<8x8xf32>
    %136 = math.exp %135 : vector<8x8xf32>
    %cst_52 = arith.constant dense<0.000000e+00> : vector<8xf32>
    %137 = vector.multi_reduction <add>, %136, %cst_52 [1] : vector<8x8xf32> to vector<8xf32>
    %138 = vector.shape_cast %137 : vector<8xf32> to vector<8x1xf32>
    %139 = tpu.reciprocal %138 {approx = true} : vector<8x1xf32> -> vector<8x1xf32>
    %140 = vector.broadcast %139 : vector<8x1xf32> to vector<8x8xf32>
    %141 = arith.mulf %136, %140 : vector<8x8xf32>
    %c1_53 = arith.constant 1 : index
    %c2_54 = arith.constant 2 : index
    %c0_55 = arith.constant 0 : index
    %c0_56 = arith.constant 0 : index
    %142 = vector.load %arg6[%c1_53, %c2_54, %c0_55, %c0_56] : memref<2x4x8x8xf32, #tpu.memory_space<vmem>>, vector<1x1x8x8xf32>
    %143 = vector.shape_cast %142 : vector<1x1x8x8xf32> to vector<8x8xf32>
    %144 = vector.shape_cast %141 : vector<8x8xf32> to vector<1x1x8x8xf32>
    tpu.vector_store %arg6[%c1_53, %c2_54, %c0_55, %c0_56], %144 {strides = array<i32>} : memref<2x4x8x8xf32, #tpu.memory_space<vmem>>, vector<1x1x8x8xf32>,
    %145 = arith.truncf %141 : vector<8x8xf32> to vector<8x8xbf16>
    %cst_57 = arith.constant dense<0.000000e+00> : vector<8x8xf32>
    %146 = tpu.matmul %145, %130, %cst_57 {dimension_numbers = #tpu.dot_dimension_numbers<[1], [0], [0], [1], [0, 0, 1, 1], [], []>} : vector<8x8xbf16>, vector<8x8xbf16>, vector<8x8xf32> -> vector<8x8xf32>
    %147 = vector.extract_strided_slice %8 {offsets = [8, 24], sizes = [8, 8], strides = [1, 1]} : vector<16x32xbf16> to vector<8x8xbf16>
    %148 = vector.extract_strided_slice %10 {offsets = [8, 24], sizes = [8, 8], strides = [1, 1]} : vector<16x32xbf16> to vector<8x8xbf16>
    %149 = vector.extract_strided_slice %12 {offsets = [8, 24], sizes = [8, 8], strides = [1, 1]} : vector<16x32xbf16> to vector<8x8xbf16>
    %cst_58 = arith.constant dense<0.000000e+00> : vector<8x8xf32>
    %150 = tpu.matmul %147, %148, %cst_58 {dimension_numbers = #tpu.dot_dimension_numbers<[1], [1], [0], [0], [0, 0, 1, 0], [], []>} : vector<8x8xbf16>, vector<8x8xbf16>, vector<8x8xf32> -> vector<8x8xf32>
    %cst_59 = arith.constant dense<0xFF800000> : vector<8xf32>
    %151 = vector.multi_reduction <maximumf>, %150, %cst_59 [1] : vector<8x8xf32> to vector<8xf32>
    %152 = vector.shape_cast %151 : vector<8xf32> to vector<8x1xf32>
    %153 = vector.broadcast %152 : vector<8x1xf32> to vector<8x8xf32>
    %154 = arith.subf %150, %153 : vector<8x8xf32>
    %155 = math.exp %154 : vector<8x8xf32>
    %cst_60 = arith.constant dense<0.000000e+00> : vector<8xf32>
    %156 = vector.multi_reduction <add>, %155, %cst_60 [1] : vector<8x8xf32> to vector<8xf32>
    %157 = vector.shape_cast %156 : vector<8xf32> to vector<8x1xf32>
    %158 = tpu.reciprocal %157 {approx = true} : vector<8x1xf32> -> vector<8x1xf32>
    %159 = vector.broadcast %158 : vector<8x1xf32> to vector<8x8xf32>
    %160 = arith.mulf %155, %159 : vector<8x8xf32>
    %c1_61 = arith.constant 1 : index
    %c3_62 = arith.constant 3 : index
    %c0_63 = arith.constant 0 : index
    %c0_64 = arith.constant 0 : index
    %161 = vector.load %arg6[%c1_61, %c3_62, %c0_63, %c0_64] : memref<2x4x8x8xf32, #tpu.memory_space<vmem>>, vector<1x1x8x8xf32>
    %162 = vector.shape_cast %161 : vector<1x1x8x8xf32> to vector<8x8xf32>
    %163 = vector.shape_cast %160 : vector<8x8xf32> to vector<1x1x8x8xf32>
    tpu.vector_store %arg6[%c1_61, %c3_62, %c0_63, %c0_64], %163 {strides = array<i32>} : memref<2x4x8x8xf32, #tpu.memory_space<vmem>>, vector<1x1x8x8xf32>,
    %164 = arith.truncf %160 : vector<8x8xf32> to vector<8x8xbf16>
    %cst_65 = arith.constant dense<0.000000e+00> : vector<8x8xf32>
    %165 = tpu.matmul %164, %149, %cst_65 {dimension_numbers = #tpu.dot_dimension_numbers<[1], [0], [0], [1], [0, 0, 1, 1], [], []>} : vector<8x8xbf16>, vector<8x8xbf16>, vector<8x8xf32> -> vector<8x8xf32>
    %166 = tpu.concatenate %108, %127, %146, %165 in 1 : vector<8x8xf32>, vector<8x8xf32>, vector<8x8xf32>, vector<8x8xf32> -> vector<8x32xf32>
    %167 = tpu.concatenate %89, %166 in 0 : vector<8x32xf32>, vector<8x32xf32> -> vector<16x32xf32>
    %168 = arith.truncf %167 : vector<16x32xf32> to vector<16x32xbf16>
    %c0_66 = arith.constant 0 : index
    %c0_67 = arith.constant 0 : index
    %169 = vector.load %arg3[%c0_66, %c0_67] : memref<32x32xbf16, #tpu.memory_space<vmem>>, vector<32x32xbf16>
    %cst_68 = arith.constant dense<0.000000e+00> : vector<16x32xf32>
    %170 = tpu.matmul %168, %169, %cst_68 {dimension_numbers = #tpu.dot_dimension_numbers<[1], [0], [0], [1], [0, 0, 1, 1], [], []>} : vector<16x32xbf16>, vector<32x32xbf16>, vector<16x32xf32> -> vector<16x32xf32>
    %c0_69 = arith.constant 0 : index
    %c0_70 = arith.constant 0 : index
    %171 = vector.load %arg4[%c0_69, %c0_70] : memref<1x32xf32, #tpu.memory_space<vmem>>, vector<1x32xf32>
    %172 = vector.broadcast %171 : vector<1x32xf32> to vector<16x32xf32>
    %173 = arith.addf %170, %172 : vector<16x32xf32>
    %174 = vector.shape_cast %173 : vector<16x32xf32> to vector<2x8x32xf32>
    %c0_71 = arith.constant 0 : index
    %c0_72 = arith.constant 0 : index
    %c0_73 = arith.constant 0 : index
    %175 = vector.load %arg5[%c0_71, %c0_72, %c0_73] : memref<2x8x32xf32, #tpu.memory_space<vmem>>, vector<2x8x32xf32>
    tpu.vector_store %arg5[%c0_71, %c0_72, %c0_73], %174 {strides = array<i32>} : memref<2x8x32xf32, #tpu.memory_space<vmem>>, vector<2x8x32xf32>,
    return
  }
  func.func @transform_0(%arg0: i32) -> (i32, i32, i32) {
    %c0_i32 = arith.constant 0 : i32
    %c0_i32_0 = arith.constant 0 : i32
    %c0_i32_1 = arith.constant 0 : i32
    return %arg0, %c0_i32, %c0_i32_0 : i32, i32, i32
  }
  func.func @transform_1(%arg0: i32) -> (i32, i32) {
    %c0_i32 = arith.constant 0 : i32
    %c0_i32_0 = arith.constant 0 : i32
    %c0_i32_1 = arith.constant 0 : i32
    return %c0_i32, %c0_i32_0 : i32, i32
  }
  func.func @transform_2(%arg0: i32) -> (i32, i32) {
    %c0_i32 = arith.constant 0 : i32
    %c0_i32_0 = arith.constant 0 : i32
    %c0_i32_1 = arith.constant 0 : i32
    return %c0_i32, %c0_i32_0 : i32, i32
  }
  func.func @transform_3(%arg0: i32) -> (i32, i32) {
    %c0_i32 = arith.constant 0 : i32
    %c0_i32_0 = arith.constant 0 : i32
    %c0_i32_1 = arith.constant 0 : i32
    return %c0_i32, %c0_i32_0 : i32, i32
  }
  func.func @transform_4(%arg0: i32) -> (i32, i32, i32) {
    %c0_i32 = arith.constant 0 : i32
    %c0_i32_0 = arith.constant 0 : i32
    %c0_i32_1 = arith.constant 0 : i32
    return %arg0, %c0_i32, %c0_i32_0 : i32, i32, i32
  }
  func.func @transform_5(%arg0: i32) -> (i32, i32, i32, i32) {
    %c0_i32 = arith.constant 0 : i32
    %c0_i32_0 = arith.constant 0 : i32
    %c0_i32_1 = arith.constant 0 : i32
    %c0_i32_2 = arith.constant 0 : i32
    return %arg0, %c0_i32, %c0_i32_0, %c0_i32_1 : i32, i32, i32, i32
  }
}

</mosaic_0001>

<bundles_post_ra>
// kernel: tpu_custom_call.1
= control target key start
LH: loop header
LB: loop body
LE: loop exit
PB: predicated region body
PF: predicated region fallthrough
CT: control target
= control target key end

     0   :  { %11 = vsyncpa [#allocation3], 0  ;;  %s1852_s0 = inlined_call_operand.hbm [shape: f32[2,8,32], index: 0, kind: input, shape index: {}]   ;;  %s1853_s1 = inlined_call_operand.hbm [shape: bf16[32,96], index: 1, kind: input, shape index: {}]   ;;  %s1854_s2 = inlined_call_operand.hbm [shape: bf16[32,32], index: 2, kind: input, shape index: {}]   ;;  %s1855_s3 = inlined_call_operand.vmem [shape: f32[1,32], index: 3, kind: input, shape index: {}]   ;;  %s1856_s4 = inlined_call_operand.hbm [shape: f32[2,8,32], index: 4, kind: output, shape index: {0}]   ;;  %s1857_s5 = inlined_call_operand.hbm [shape: f32[2,4,8,8], index: 5, kind: output, shape index: {1}]  }
   0x1   :  { %12 = vsyncpa [#allocation6], 0 }
   0x2   :  { %13 = vsyncpa [#allocation4], 0 }
   0x3   :  { %14 = vsyncpa [#allocation10], 0  ;;  %s1529_s18 = smov [#allocation5]   ;;  %s1411_s22 = scalar_lea.hbm %s1853_s1, 256 }
   0x4   :  { %s32_s19 = sshll.u32 %s1529_s18, 4  ;;  %p1412_p0 = scmp.ne.s32.totalorder %s1853_s1, %s1411_s22  ;;  %s33_s19 = int_to_ptr.vmem [resolvable:$true] %s32_s19 }
   0x5   :  { %p1415_p1 = scmp.lt.u32.totalorder %s1411_s22, %s1853_s1 }
   0x7   :  { %p1417_p2 = pnand %p1415_p1, %p1412_p0 }
   0x9   :  { %1420 = shalt.err (!%p1417_p2)
}
   0xa   :  { %s1421_s27 = scalar_lea.vmem %s33_s19, 256  ;;  %p1426_p4 = scmp.lt.s32.totalorder %s33_s19, %s33_s19 }
   0xb   :  { %p1422_p3 = scmp.ne.s32.totalorder %s33_s19, %s1421_s27  ;;  %p1427_p5 = scmp.lt.s32.totalorder %s1421_s27, %s1421_s27 }
   0xd   :  { %p1428_p6 = por %p1427_p5, %p1426_p4 }
   0xf   :  { %p1429_p7 = pnand %p1428_p6, %p1422_p3 }
  0x11   :  { %1432 = shalt.err (!%p1429_p7)
}
  0x12   :  { %s1530_s28 = smov 64   ;;  %s1531_s29 = smov 4  }
  0x13   :  { %38 = dma.hbm_to_vmem [thread:$0]  %s1853_s1, 256, %s33_s19, [#allocation6], %s1530_s28, %s1530_s28, %s1531_s29  }
  0x14   :  { %s1532_s7 = smov [#allocation2]   ;;  %s1433_s11 = scalar_lea.hbm %s1852_s0, 256 }
  0x15   :  { %s20_s8 = sshll.u32 %s1532_s7, 4  ;;  %p1434_p8 = scmp.ne.s32.totalorder %s1852_s0, %s1433_s11  ;;  %s21_s8 = int_to_ptr.vmem [resolvable:$true] %s20_s8 }
  0x16   :  { %p1437_p9 = scmp.lt.u32.totalorder %s1433_s11, %s1852_s0 }
  0x18   :  { %p1439_p10 = pnand %p1437_p9, %p1434_p8 }
  0x1a   :  { %1442 = shalt.err (!%p1439_p10)
}
  0x1b   :  { %s1443_s16 = scalar_lea.vmem %s21_s8, 256  ;;  %p1448_p12 = scmp.lt.s32.totalorder %s21_s8, %s21_s8 }
  0x1c   :  { %p1444_p11 = scmp.ne.s32.totalorder %s21_s8, %s1443_s16  ;;  %p1449_p13 = scmp.lt.s32.totalorder %s1443_s16, %s1443_s16 }
  0x1e   :  { %p1450_p0 = por %p1449_p13, %p1448_p12 }
  0x20   :  { %p1451_p1 = pnand %p1450_p0, %p1444_p11 }
  0x22   :  { %1454 = shalt.err (!%p1451_p1)
}
  0x23   :  { %s1533_s1 = smov 128   ;;  %s1534_s17 = smov 8  }
  0x24   :  { %26 = dma.hbm_to_vmem [thread:$0]  %s1852_s0, 256, %s21_s8, [#allocation3], %s1533_s1, %s1533_s1, %s1534_s17  }
  0x25   :  { %s1535_s20 = smov [#allocation7]   ;;  %s1455_s24 = scalar_lea.hbm %s1854_s2, 256 }
  0x26   :  { %s44_s21 = sshll.u32 %s1535_s20, 4  ;;  %p1456_p2 = scmp.ne.s32.totalorder %s1854_s2, %s1455_s24  ;;  %s45_s21 = int_to_ptr.vmem [resolvable:$true] %s44_s21 }
  0x27   :  { %p1459_p3 = scmp.lt.u32.totalorder %s1455_s24, %s1854_s2 }
  0x29   :  { %p1461_p4 = pnand %p1459_p3, %p1456_p2 }
  0x2b   :  { %1464 = shalt.err (!%p1461_p4)
}
  0x2c   :  { %s1465_s6 = scalar_lea.vmem %s45_s21, 256  ;;  %p1470_p6 = scmp.lt.s32.totalorder %s45_s21, %s45_s21 }
  0x2d   :  { %p1466_p5 = scmp.ne.s32.totalorder %s45_s21, %s1465_s6  ;;  %p1471_p7 = scmp.lt.s32.totalorder %s1465_s6, %s1465_s6 }
  0x2f   :  { %p1472_p8 = por %p1471_p7, %p1470_p6 }
  0x31   :  { %p1473_p9 = pnand %p1472_p8, %p1466_p5 }
  0x33   :  { %1476 = shalt.err (!%p1473_p9)
}
  0x34   :  { %50 = dma.hbm_to_vmem [thread:$0]  %s1854_s2, 256, %s45_s21, [#allocation6], %s1530_s28, %s1530_s28, %s1531_s29  }
  0x35   :  { %1521 = dma.done.wait [#allocation3], 256  }
  0x36   :  { %1522 = vsyncadd [#allocation3], 4294967040 }
  0x37   :  { %1523 = dma.done.wait [#allocation6], 512  }
  0x38   :  { %1524 = vsyncadd [#allocation6], 4294966784  ;;  %v1536_v0 = vmov 0.0   ;;  %vm1537_vm0 = vmmov 0   ;;  %v1375_v1 = vld [vmem:[#allocation5] sm:$0xff]   ;;  %v1376_v2 = vld [vmem:[#allocation5 + $0x8] sm:$0xff]  }
  0x39   :  { %1225 = vmatprep.subr.bf16.mxu0 %v1536_v0  ;;  %1229 = vmatprep.mubr.msk.bf16.mxu0 %vm1537_vm0, %v1536_v0  ;;  %v63_v3 = vld [vmem:[#allocation2] sm:$0xff]  ;;  %v64_v4 = vld [vmem:[#allocation2 + $0x8] sm:$0xff]  ;;  %vm82_vm1 = vcmask 261120   ;;  %s1538_s2 = smov 96   ;;  %s1539_s29 = smov 120   ;;  %vm134_vm2 = vcmask 64512  }
  0x3a   :  { %1233 = vmatprep.subr.bf16.mxu1 %v1536_v0  ;;  %1235 = vmatprep.mubr.msk.bf16.mxu1 %vm1537_vm0, %v1536_v0  ;;  %v65_v5 = vpack.c.bf16 %v64_v4, %v63_v3  ;;  %s1540_s8 = smov 88   ;;  %s1541_s9 = smov 80   ;;  %vm199_vm3 = vcmask 1043456   ;;  %vm593_vm4 = vcmask 130048   ;;  %vm595_vm5 = vcmask 195584  }
  0x3b   :  { %1226 = vmatpush3.bf16.msra.mxu0 %v1375_v1  ;;  %s1542_s10 = smov 112   ;;  %s1543_s11 = smov 72  }
  0x3c   :  { %1227 = vmatprep.subr.bf16.mxu0 %v1536_v0  ;;  %s1544_s12 = smov 104   ;;  %s1545_s13 = smov 56  }
  0x3d   :  { %s1546_s14 = smov 48   ;;  %s1547_s15 = smov 40  }
  0x3e   :  { %s1549_s16 = smov 24   ;;  %s1550_s18 = smov [#allocation9]  }
  0x3f   :  { %1228 = vmatpush3.bf16.msra.mxu0 %v1376_v2  ;;  %s1147_s19 = sshll.u32 %s1550_s18, 4  ;;  %s1148_s19 = int_to_ptr.vmem [resolvable:$true] %s1147_s19 }
  0x40   :  { %1239 = vmatprep.subr.bf16.mxu0 %v1536_v0  ;;  %s1477_s20 = scalar_lea.vmem %s1148_s19, 1024  ;;  %p1482_p11 = scmp.lt.s32.totalorder %s1148_s19, %s1148_s19 }
  0x41   :  { %p1478_p10 = scmp.ne.s32.totalorder %s1148_s19, %s1477_s20  ;;  %p1483_p12 = scmp.lt.s32.totalorder %s1477_s20, %s1477_s20 }
  0x42   :  { %1230 = vmatmul.mubr.msk.bf16.vlgmr.msra.gmra.mrb[0].mxu0 %vm82_vm1, %v65_v5 }
  0x43   :  { %1241 = vmatprep.mubr.msk.bf16.mxu0 %vm1537_vm0, %v1536_v0  ;;  %p1484_p13 = por %p1483_p12, %p1482_p11 }
  0x45   :  { %p1485_p0 = pnand %p1484_p13, %p1478_p10 }
 0x115   :  { %v120_v6 = vpop.f32.mrb[0].mxu0 }
 0x116   :  { %v1231_v7 = vpop.f32.mrb[1].mxu0  ;;  %v127_v9 = vmul.f32 0.35355338, %v120_v6 }
 0x117   :  { %v123_v8 = vpop.f32.mrb[2].mxu0 }
 0x118   :  { %v128_v10 = vmul.f32 0.35355338, %v123_v8  ;;  %v1638_v11 = vpack.c.bf16 %v123_v8, %v120_v6  ;;  %v1232_v12 = vpop.f32.mrb[3].mxu0 }
 0x11a   :  { %v129_v13 = vpack.c.bf16 %v128_v10, %v127_v9  ;;  %132 = vrot.lane.b32.xlu0 %v1638_v11, %s1538_s2  ;;  %v1645_v14 = vrot.slane %v1638_v11, 4 }
 0x11c   :  { %244 = vrot.lane.b32.xlu1 %v129_v13, %s1539_s29  ;;  %v597_v15 = vrot.slane %v129_v13, 4 }
 0x11e   :  { %246 = vrot.lane.b32.xlu0 %v1638_v11, %s1540_s8 }
 0x120   :  { %358 = vrot.lane.b32.xlu1 %v1638_v11, %s1541_s9 }
 0x122   :  { %356 = vrot.lane.b32.xlu0 %v129_v13, %s1542_s10 }
 0x124   :  { %470 = vrot.lane.b32.xlu1 %v1638_v11, %s1543_s11 }
 0x126   :  { %468 = vrot.lane.b32.xlu0 %v129_v13, %s1544_s12 }
 0x128   :  { %599 = vrot.lane.b32.xlu1 %v1645_v14, %s1538_s2 }
 0x12a   :  { %711 = vrot.lane.b32.xlu0 %v1645_v14, %s1540_s8 }
 0x12c   :  { %709 = vrot.lane.b32.xlu1 %v597_v15, %s1539_s29 }
 0x12e   :  { %823 = vrot.lane.b32.xlu0 %v1645_v14, %s1541_s9 }
 0x130   :  { %821 = vrot.lane.b32.xlu1 %v597_v15, %s1542_s10 }
 0x132   :  { %935 = vrot.lane.b32.xlu0 %v1645_v14, %s1543_s11 }
 0x134   :  { %933 = vrot.lane.b32.xlu1 %v597_v15, %s1544_s12 }
 0x18c   :  { %v133_v16 = vpop.permute.xlu0 %132 }
 0x18d   :  { %v139_v17 = vsel %vm134_vm2, %v133_v16, 0 }
 0x18e   :  { %1234 = vmatpush3.bf16.xpose.msra.mxu1 %v139_v17  ;;  %v245_v19 = vpop.permute.xlu1 %244 }
 0x18f   :  { %1245 = vmatprep.subr.bf16.mxu1 %v1536_v0 }
 0x190   :  { %v247_v18 = vpop.permute.xlu0 %246 }
 0x191   :  { %v252_v20 = vsel %vm134_vm2, %v247_v18, 0 }
 0x192   :  { %v359_v21 = vpop.permute.xlu1 %358 }
 0x193   :  { %v364_v22 = vsel %vm134_vm2, %v359_v21, 0 }
 0x194   :  { %v357_v24 = vpop.permute.xlu0 %356 }
 0x195   :  { %1236 = vmatmul.mubr.msk.bf16.vlgmr.msra.gmra.mrb[0].mxu1 %vm134_vm2, %v129_v13 }
 0x196   :  { %1246 = vmatpush3.bf16.xpose.msra.mxu1 %v252_v20  ;;  %1247 = vmatprep.mubr.msk.bf16.mxu1 %vm1537_vm0, %v1536_v0  ;;  %v471_v23 = vpop.permute.xlu1 %470 }
 0x197   :  { %1257 = vmatprep.subr.bf16.mxu1 %v1536_v0  ;;  %v476_v25 = vsel %vm134_vm2, %v471_v23, 0 }
 0x198   :  { %v469_v27 = vpop.permute.xlu0 %468 }
 0x19a   :  { %v600_v26 = vpop.permute.xlu1 %599 }
 0x19b   :  { %v605_v28 = vsel %vm134_vm2, %v600_v26, 0 }
 0x19c   :  { %v712_v29 = vpop.permute.xlu0 %711 }
 0x19d   :  { %1248 = vmatmul.mubr.msk.bf16.vlgmr.msra.gmra.mrb[4].mxu1 %vm134_vm2, %v245_v19  ;;  %v717_v30 = vsel %vm134_vm2, %v712_v29, 0 }
 0x19e   :  { %1258 = vmatpush3.bf16.xpose.msra.mxu1 %v364_v22  ;;  %1259 = vmatprep.mubr.msk.bf16.mxu1 %vm1537_vm0, %v1536_v0  ;;  %v710_v32 = vpop.permute.xlu1 %709 }
 0x19f   :  { %1269 = vmatprep.subr.bf16.mxu1 %v1536_v0 }
 0x1a0   :  { %v824_v31 = vpop.permute.xlu0 %823 }
 0x1a1   :  { %v829_v33 = vsel %vm134_vm2, %v824_v31, 0 }
 0x1a2   :  { %v822_v35 = vpop.permute.xlu1 %821 }
 0x1a4   :  { %v936_v34 = vpop.permute.xlu0 %935 }
 0x1a5   :  { %1260 = vmatmul.mubr.msk.bf16.vlgmr.msra.gmra.mrb[8].mxu1 %vm134_vm2, %v357_v24  ;;  %v941_v36 = vsel %vm134_vm2, %v936_v34, 0 }
 0x1a6   :  { %1270 = vmatpush3.bf16.xpose.msra.mxu1 %v476_v25  ;;  %1271 = vmatprep.mubr.msk.bf16.mxu1 %vm1537_vm0, %v1536_v0  ;;  %v934_v37 = vpop.permute.xlu1 %933 }
 0x1a7   :  { %1281 = vmatprep.subr.bf16.mxu1 %v1536_v0 }
 0x1ad   :  { %1272 = vmatmul.mubr.msk.bf16.vlgmr.msra.gmra.mrb[12].mxu1 %vm134_vm2, %v469_v27 }
 0x1ae   :  { %1282 = vmatpush3.bf16.xpose.msra.mxu1 %v605_v28  ;;  %1283 = vmatprep.mubr.msk.bf16.mxu1 %vm1537_vm0, %v1536_v0 }
 0x1af   :  { %1293 = vmatprep.subr.bf16.mxu1 %v1536_v0 }
 0x1b5   :  { %1284 = vmatmul.mubr.msk.bf16.vlgmr.msra.gmra.mrb[16].mxu1 %vm134_vm2, %v597_v15 }
 0x1b6   :  { %1294 = vmatpush3.bf16.xpose.msra.mxu1 %v717_v30  ;;  %1295 = vmatprep.mubr.msk.bf16.mxu1 %vm1537_vm0, %v1536_v0 }
 0x1b7   :  { %1305 = vmatprep.subr.bf16.mxu1 %v1536_v0 }
 0x1bd   :  { %1296 = vmatmul.mubr.msk.bf16.vlgmr.msra.gmra.mrb[20].mxu1 %vm134_vm2, %v710_v32 }
 0x1be   :  { %1306 = vmatpush3.bf16.xpose.msra.mxu1 %v829_v33  ;;  %1307 = vmatprep.mubr.msk.bf16.mxu1 %vm1537_vm0, %v1536_v0 }
 0x1bf   :  { %1317 = vmatprep.subr.bf16.mxu1 %v1536_v0 }
 0x1c5   :  { %1308 = vmatmul.mubr.msk.bf16.vlgmr.msra.gmra.mrb[24].mxu1 %vm134_vm2, %v822_v35 }
 0x1c6   :  { %1318 = vmatpush3.bf16.xpose.msra.mxu1 %v941_v36  ;;  %1319 = vmatprep.mubr.msk.bf16.mxu1 %vm1537_vm0, %v1536_v0 }
 0x1c7   :  { %1329 = vmatprep.subr.bf16.mxu1 %v1536_v0 }
 0x1cd   :  { %1320 = vmatmul.mubr.msk.bf16.vlgmr.msra.gmra.mrb[28].mxu1 %vm134_vm2, %v934_v37 }
 0x1ce   :  { %1333 = vmatprep.mubr.msk.bf16.mxu1 %vm1537_vm0, %v1536_v0 }
 0x268   :  { %v175_v38 = vpop.f32.mrb[0].mxu1 }
 0x269   :  { %v1237_v39 = vpop.f32.mrb[1].mxu1  ;;  %v181_v40 = vsel %vm134_vm2, %v175_v38, -inf }
 0x26a   :  { %182 = vmax.xlane.f32.xlu0 %v181_v40  ;;  %v178_v41 = vpop.f32.mrb[2].mxu1 }
 0x26b   :  { %v1238_v42 = vpop.f32.mrb[3].mxu1 }
 0x270   :  { %v288_v43 = vpop.f32.mrb[4].mxu1 }
 0x271   :  { %v1249_v44 = vpop.f32.mrb[5].mxu1  ;;  %v294_v45 = vsel %vm134_vm2, %v288_v43, -inf }
 0x272   :  { %295 = vmax.xlane.f32.xlu1 %v294_v45  ;;  %v291_v46 = vpop.f32.mrb[6].mxu1 }
 0x273   :  { %v1250_v47 = vpop.f32.mrb[7].mxu1 }
 0x278   :  { %v400_v48 = vpop.f32.mrb[8].mxu1 }
 0x279   :  { %v1261_v49 = vpop.f32.mrb[9].mxu1  ;;  %v406_v50 = vsel %vm134_vm2, %v400_v48, -inf }
 0x27a   :  { %407 = vmax.xlane.f32.xlu0 %v406_v50  ;;  %v403_v51 = vpop.f32.mrb[10].mxu1 }
 0x27b   :  { %v1262_v52 = vpop.f32.mrb[11].mxu1 }
 0x280   :  { %v1694_v53 = vpop.f32.mrb[12].mxu1 }
 0x281   :  { %v1273_v54 = vpop.f32.mrb[13].mxu1  ;;  %v518_v55 = vsel %vm134_vm2, %v1694_v53, -inf }
 0x282   :  { %519 = vmax.xlane.f32.xlu0 %v518_v55  ;;  %v515_v56 = vpop.f32.mrb[14].mxu1 }
 0x283   :  { %v1274_v57 = vpop.f32.mrb[15].mxu1 }
 0x288   :  { %v1698_v58 = vpop.f32.mrb[16].mxu1 }
 0x289   :  { %v1285_v59 = vpop.f32.mrb[17].mxu1  ;;  %v647_v60 = vsel %vm134_vm2, %v1698_v58, -inf }
 0x28a   :  { %648 = vmax.xlane.f32.xlu1 %v647_v60  ;;  %v644_v61 = vpop.f32.mrb[18].mxu1 }
 0x28b   :  { %v1286_v62 = vpop.f32.mrb[19].mxu1 }
 0x290   :  { %v753_v63 = vpop.f32.mrb[20].mxu1 }
 0x291   :  { %v1297_v1 = vpop.f32.mrb[21].mxu1  ;;  %v759_v2 = vsel %vm134_vm2, %v753_v63, -inf }
 0x292   :  { %760 = vmax.xlane.f32.xlu0 %v759_v2  ;;  %v756_v3 = vpop.f32.mrb[22].mxu1 }
 0x293   :  { %v1298_v4 = vpop.f32.mrb[23].mxu1 }
 0x298   :  { %v865_v5 = vpop.f32.mrb[24].mxu1 }
 0x299   :  { %v1309_v6 = vpop.f32.mrb[25].mxu1  ;;  %v871_v7 = vsel %vm134_vm2, %v865_v5, -inf }
 0x29a   :  { %872 = vmax.xlane.f32.xlu1 %v871_v7  ;;  %v868_v8 = vpop.f32.mrb[26].mxu1 }
 0x29b   :  { %v1310_v9 = vpop.f32.mrb[27].mxu1 }
 0x2a0   :  { %v1704_v10 = vpop.f32.mrb[28].mxu1 }
 0x2a1   :  { %v1321_v12 = vpop.f32.mrb[29].mxu1  ;;  %v983_v16 = vsel %vm134_vm2, %v1704_v10, -inf }
 0x2a2   :  { %v980_v13 = vpop.f32.mrb[30].mxu1 }
 0x2a3   :  { %v1322_v15 = vpop.f32.mrb[31].mxu1 }
 0x2a8   :  { %308 = vrot.lane.b32.xlu0 %v1638_v11, %s1545_s13 }
 0x2ab   :  { %194 = vrot.lane.b32.xlu1 %v1638_v11, %s1530_s28 }
 0x2c7   :  { %984 = vmax.xlane.f32.xlu0 %v983_v16 }
 0x2f7   :  { %v183_v17 = vpop.xlane.xlu0 %182 }
 0x2f8   :  { %v184_v18 = vsub.f32 %v175_v38, %v183_v17 }
 0x2fa   :  { %v185_v19 = vmul.f32 1.442695, %v184_v18 }
 0x2fc   :  { %1379 = vpow2.f32 %v185_v19 }
 0x2ff   :  { %v296_v20 = vpop.xlane.xlu1 %295 }
 0x300   :  { %v297_v21 = vsub.f32 %v288_v43, %v296_v20 }
 0x302   :  { %v298_v22 = vmul.f32 1.442695, %v297_v21 }
 0x304   :  { %1381 = vpow2.f32 %v298_v22 }
 0x306   :  { %v1712_v23 = vpop.eup %1379 }
 0x307   :  { %v408_v24 = vpop.xlane.xlu0 %407  ;;  %v187_v25 = vsel %vm134_vm2, %v1712_v23, 0.0 }
 0x308   :  { %v409_v26 = vsub.f32 %v400_v48, %v408_v24  ;;  %188 = vadd.xlane.f32.xlu1 %v187_v25 }
 0x30a   :  { %v410_v27 = vmul.f32 1.442695, %v409_v26 }
 0x30c   :  { %1383 = vpow2.f32 %v410_v27 }
 0x30e   :  { %v1716_v28 = vpop.eup %1381 }
 0x30f   :  { %v300_v29 = vsel %vm134_vm2, %v1716_v28, 0.0  ;;  %v520_v35 = vpop.xlane.xlu0 %519 }
 0x310   :  { %301 = vadd.xlane.f32.xlu0 %v300_v29  ;;  %v521_v37 = vsub.f32 %v1694_v53, %v520_v35 }
 0x312   :  { %v522_v38 = vmul.f32 1.442695, %v521_v37 }
 0x314   :  { %1385 = vpow2.f32 %v522_v38 }
 0x316   :  { %v1720_v30 = vpop.eup %1383 }
 0x317   :  { %v412_v31 = vsel %vm134_vm2, %v1720_v30, 0.0  ;;  %v649_v32 = vpop.xlane.xlu1 %648 }
 0x318   :  { %413 = vadd.xlane.f32.xlu1 %v412_v31  ;;  %v650_v39 = vsub.f32 %v1698_v58, %v649_v32 }
 0x31a   :  { %v651_v42 = vmul.f32 1.442695, %v650_v39 }
 0x31c   :  { %1387 = vpow2.f32 %v651_v42 }
 0x31e   :  { %v1732_v45 = vpop.eup %1385 }
 0x31f   :  { %v761_v40 = vpop.xlane.xlu0 %760  ;;  %v524_v46 = vsel %vm134_vm2, %v1732_v45, 0.0 }
 0x320   :  { %v762_v41 = vsub.f32 %v753_v63, %v761_v40 }
 0x322   :  { %v763_v44 = vmul.f32 1.442695, %v762_v41 }
 0x323   :  { %v309_v53 = vpop.permute.xlu0 %308 }
 0x324   :  { %1389 = vpow2.f32 %v763_v44  ;;  %v314_v1 = vsel %vm199_vm3, %v309_v53, 0 }
 0x326   :  { %420 = vrot.lane.b32.xlu0 %v1638_v11, %s1546_s14  ;;  %v1736_v47 = vpop.eup %1387 }
 0x327   :  { %v873_v33 = vpop.xlane.xlu1 %872  ;;  %v653_v49 = vsel %vm134_vm2, %v1736_v47, 0.0 }
 0x328   :  { %v874_v43 = vsub.f32 %v865_v5, %v873_v33 }
 0x329   :  { %532 = vrot.lane.b32.xlu1 %v1638_v11, %s1547_s15 }
 0x32a   :  { %v875_v11 = vmul.f32 1.442695, %v874_v43 }
 0x32b   :  { %v195_v34 = vpop.permute.xlu1 %194 }
 0x32c   :  { %v201_v36 = vsel %vm199_vm3, %v195_v34, 0  ;;  %1391 = vpow2.f32 %v875_v11 }
 0x32d   :  { %1240 = vmatpush3.bf16.msra.mxu0 %v201_v36 }
 0x32e   :  { %1251 = vmatprep.subr.bf16.mxu0 %v1536_v0  ;;  %v1738_v48 = vpop.eup %1389 }
 0x32f   :  { %v765_v51 = vsel %vm134_vm2, %v1738_v48, 0.0 }
 0x336   :  { %v1742_v50 = vpop.eup %1391 }
 0x337   :  { %v877_v52 = vsel %vm134_vm2, %v1742_v50, 0.0 }
 0x345   :  { %525 = vadd.xlane.f32.xlu0 %v524_v46 }
 0x349   :  { %654 = vadd.xlane.f32.xlu0 %v653_v49 }
 0x34d   :  { %766 = vadd.xlane.f32.xlu1 %v765_v51  ;;  %878 = vadd.xlane.f32.xlu0 %v877_v52 }
 0x354   :  { %v985_v54 = vpop.xlane.xlu0 %984 }
 0x355   :  { %v986_v55 = vsub.f32 %v1704_v10, %v985_v54 }
 0x357   :  { %v987_v56 = vmul.f32 1.442695, %v986_v55 }
 0x359   :  { %1393 = vpow2.f32 %v987_v56 }
 0x35e   :  { %773 = vrot.lane.b32.xlu1 %v1645_v14, %s1545_s13 }
 0x362   :  { %885 = vrot.lane.b32.xlu1 %v1645_v14, %s1546_s14 }
 0x363   :  { %v1753_v57 = vpop.eup %1393 }
 0x364   :  { %v989_v58 = vsel %vm134_vm2, %v1753_v57, 0.0 }
 0x365   :  { %990 = vadd.xlane.f32.xlu0 %v989_v58 }
 0x366   :  { %997 = vrot.lane.b32.xlu1 %v1645_v14, %s1547_s15 }
 0x37b   :  { %661 = vrot.lane.b32.xlu0 %v1645_v14, %s1530_s28  ;;  %s1548_s28 = smov 16  }
 0x395   :  { %v189_v59 = vpop.xlane.xlu1 %188 }
 0x396   :  { %1395 = vrcp.f32 %v189_v59 }
 0x39d   :  { %v302_v60 = vpop.xlane.xlu0 %301 }
 0x39e   :  { %1397 = vrcp.f32 %v302_v60 }
 0x3a0   :  { %v1396_v61 = vpop.eup %1395 }
 0x3a1   :  { %v191_v62 = vmul.f32 %v1396_v61, %v1712_v23  ;;  %v421_v4 = vpop.permute.xlu0 %420 }
 0x3a2   :  { %v426_v6 = vsel %vm199_vm3, %v421_v4, 0 }
 0x3a3   :  { %192 = vst.msk [vmem:[#allocation9] sm:$0xff] %vm134_vm2, %v191_v62  ;;  %v193_v63 = vpack.c.bf16 %v191_v62, %v191_v62  ;;  %v1377_v62 = vld [vmem:[#allocation7] sm:$0xff]  }
 0x3a4   :  { %1330 = vmatpush3.bf16.msra.mxu1 %v1377_v62 }
 0x3a5   :  { %1242 = vmatmul.mubr.msk.bf16.vlgmr.msra.gmra.mrb[4].mxu0 %vm134_vm2, %v193_v63  ;;  %v414_v2 = vpop.xlane.xlu1 %413  ;;  %1331 = vmatprep.subr.bf16.mxu1 %v1536_v0 }
 0x3a6   :  { %1252 = vmatpush3.bf16.msra.mxu0 %v314_v1  ;;  %1399 = vrcp.f32 %v414_v2  ;;  %1253 = vmatprep.mubr.msk.bf16.mxu0 %vm1537_vm0, %v1536_v0 }
 0x3a7   :  { %1263 = vmatprep.subr.bf16.mxu0 %v1536_v0 }
 0x3a8   :  { %v1398_v14 = vpop.eup %1397 }
 0x3a9   :  { %v304_v3 = vmul.f32 %v1398_v14, %v1716_v28  ;;  %v533_v9 = vpop.permute.xlu1 %532 }
 0x3aa   :  { %v538_v12 = vsel %vm199_vm3, %v533_v9, 0 }
 0x3ab   :  { %306 = vst.msk [vmem:[#allocation9 + $0x8] sm:$0xff] %vm134_vm2, %v304_v3  ;;  %v307_v5 = vpack.c.bf16 %v304_v3, %v304_v3  ;;  %v1378_v3 = vld [vmem:[#allocation7 + $0x8] sm:$0xff]  }
 0x3ac   :  { %1332 = vmatpush3.bf16.msra.mxu1 %v1378_v3 }
 0x3ad   :  { %1254 = vmatmul.mubr.msk.bf16.vlgmr.msra.gmra.mrb[8].mxu0 %vm134_vm2, %v307_v5 }
 0x3ae   :  { %1264 = vmatpush3.bf16.msra.mxu0 %v426_v6  ;;  %1265 = vmatprep.mubr.msk.bf16.mxu0 %vm1537_vm0, %v1536_v0 }
 0x3af   :  { %1275 = vmatprep.subr.bf16.mxu0 %v1536_v0 }
 0x3b0   :  { %v1400_v7 = vpop.eup %1399 }
 0x3b1   :  { %v416_v8 = vmul.f32 %v1400_v7, %v1720_v30 }
 0x3b3   :  { %418 = vst.msk [vmem:[#allocation9 + $0x10] sm:$0xff] %vm134_vm2, %v416_v8  ;;  %v419_v10 = vpack.c.bf16 %v416_v8, %v416_v8 }
 0x3b5   :  { %1266 = vmatmul.mubr.msk.bf16.vlgmr.msra.gmra.mrb[12].mxu0 %vm134_vm2, %v419_v10 }
 0x3b6   :  { %1276 = vmatpush3.bf16.msra.mxu0 %v538_v12  ;;  %1277 = vmatprep.mubr.msk.bf16.mxu0 %vm1537_vm0, %v1536_v0 }
 0x3b7   :  { %1287 = vmatprep.subr.bf16.mxu0 %v1536_v0 }
 0x3d2   :  { %v526_v13 = vpop.xlane.xlu0 %525 }
 0x3d3   :  { %1401 = vrcp.f32 %v526_v13 }
 0x3d6   :  { %v655_v15 = vpop.xlane.xlu0 %654 }
 0x3d7   :  { %1403 = vrcp.f32 %v655_v15 }
 0x3da   :  { %v767_v16 = vpop.xlane.xlu1 %766  ;;  %v879_v17 = vpop.xlane.xlu0 %878 }
 0x3db   :  { %1405 = vrcp.f32 %v767_v16 }
 0x3dc   :  { %1407 = vrcp.f32 %v879_v17 }
 0x3dd   :  { %v1402_v18 = vpop.eup %1401 }
 0x3de   :  { %v528_v19 = vmul.f32 %v1402_v18, %v1732_v45  ;;  %v774_v30 = vpop.permute.xlu1 %773 }
 0x3df   :  { %v779_v32 = vsel %vm199_vm3, %v774_v30, 0 }
 0x3e0   :  { %530 = vst.msk [vmem:[#allocation9 + $0x18] sm:$0xff] %vm134_vm2, %v528_v19  ;;  %v531_v20 = vpack.c.bf16 %v528_v19, %v528_v19 }
 0x3e1   :  { %v1404_v21 = vpop.eup %1403 }
 0x3e2   :  { %v657_v22 = vmul.f32 %v1404_v21, %v1736_v47  ;;  %1278 = vmatmul.mubr.msk.bf16.vlgmr.msra.gmra.mrb[16].mxu0 %vm134_vm2, %v531_v20  ;;  %v886_v35 = vpop.permute.xlu1 %885 }
 0x3e3   :  { %1289 = vmatprep.mubr.msk.bf16.mxu0 %vm1537_vm0, %v1536_v0  ;;  %v891_v37 = vsel %vm199_vm3, %v886_v35, 0 }
 0x3e4   :  { %659 = vst.msk [vmem:[#allocation9 + $0x20] sm:$0xff] %vm134_vm2, %v657_v22  ;;  %v660_v31 = vpack.c.bf16 %v657_v22, %v657_v22 }
 0x3e5   :  { %v1406_v23 = vpop.eup %1405 }
 0x3e6   :  { %v1408_v24 = vpop.eup %1407  ;;  %v769_v25 = vmul.f32 %v1406_v23, %v1738_v48  ;;  %v998_v38 = vpop.permute.xlu1 %997 }
 0x3e7   :  { %v881_v26 = vmul.f32 %v1408_v24, %v1742_v50  ;;  %v1003_v40 = vsel %vm199_vm3, %v998_v38, 0 }
 0x3e8   :  { %771 = vst.msk [vmem:[#allocation9 + $0x28] sm:$0xff] %vm134_vm2, %v769_v25  ;;  %v772_v36 = vpack.c.bf16 %v769_v25, %v769_v25 }
 0x3e9   :  { %883 = vst.msk [vmem:[#allocation9 + $0x30] sm:$0xff] %vm134_vm2, %v881_v26  ;;  %v884_v39 = vpack.c.bf16 %v881_v26, %v881_v26 }
 0x3f2   :  { %v991_v27 = vpop.xlane.xlu0 %990 }
 0x3f3   :  { %1409 = vrcp.f32 %v991_v27 }
 0x3f6   :  { %v662_v28 = vpop.permute.xlu0 %661 }
 0x3f7   :  { %v667_v29 = vsel %vm199_vm3, %v662_v28, 0 }
 0x3f8   :  { %1288 = vmatpush3.bf16.msra.mxu0 %v667_v29 }
 0x3f9   :  { %1299 = vmatprep.subr.bf16.mxu0 %v1536_v0 }
 0x3fb   :  { %1290 = vmatmul.mubr.msk.bf16.vlgmr.msra.gmra.mrb[20].mxu0 %vm134_vm2, %v660_v31 }
 0x3fc   :  { %1300 = vmatpush3.bf16.msra.mxu0 %v779_v32  ;;  %1301 = vmatprep.mubr.msk.bf16.mxu0 %vm1537_vm0, %v1536_v0 }
 0x3fd   :  { %v1410_v33 = vpop.eup %1409  ;;  %1311 = vmatprep.subr.bf16.mxu0 %v1536_v0 }
 0x3fe   :  { %v993_v34 = vmul.f32 %v1410_v33, %v1753_v57 }
 0x400   :  { %995 = vst.msk [vmem:[#allocation9 + $0x38] sm:$0xff] %vm134_vm2, %v993_v34  ;;  %v996_v41 = vpack.c.bf16 %v993_v34, %v993_v34 }
 0x403   :  { %1302 = vmatmul.mubr.msk.bf16.vlgmr.msra.gmra.mrb[24].mxu0 %vm134_vm2, %v772_v36 }
 0x404   :  { %1312 = vmatpush3.bf16.msra.mxu0 %v891_v37  ;;  %1313 = vmatprep.mubr.msk.bf16.mxu0 %vm1537_vm0, %v1536_v0 }
 0x405   :  { %1323 = vmatprep.subr.bf16.mxu0 %v1536_v0 }
 0x40b   :  { %1314 = vmatmul.mubr.msk.bf16.vlgmr.msra.gmra.mrb[28].mxu0 %vm134_vm2, %v884_v39 }
 0x40c   :  { %1324 = vmatpush3.bf16.msra.mxu0 %v1003_v40  ;;  %1325 = vmatprep.mubr.msk.bf16.mxu0 %vm1537_vm0, %v1536_v0 }
 0x413   :  { %1326 = vmatmul.mubr.msk.bf16.vlgmr.msra.gmra.mrb[32].mxu0 %vm134_vm2, %v996_v41 }
 0x478   :  { %v237_v42 = vpop.f32.mrb[4].mxu0 }
 0x479   :  { %v1243_v43 = vpop.f32.mrb[5].mxu0 }
 0x47a   :  { %v240_v44 = vpop.f32.mrb[6].mxu0 }
 0x47b   :  { %v1244_v11 = vpop.f32.mrb[7].mxu0 }
 0x480   :  { %v350_v45 = vpop.f32.mrb[8].mxu0 }
 0x481   :  { %v1255_v46 = vpop.f32.mrb[9].mxu0 }
 0x482   :  { %v353_v47 = vpop.f32.mrb[10].mxu0 }
 0x483   :  { %v1256_v48 = vpop.f32.mrb[11].mxu0 }
 0x488   :  { %v462_v49 = vpop.f32.mrb[12].mxu0 }
 0x489   :  { %v1267_v50 = vpop.f32.mrb[13].mxu0 }
 0x48a   :  { %v465_v51 = vpop.f32.mrb[14].mxu0 }
 0x48b   :  { %v1268_v52 = vpop.f32.mrb[15].mxu0 }
 0x4b5   :  { %v574_v53 = vpop.f32.mrb[16].mxu0 }
 0x4b6   :  { %v1279_v54 = vpop.f32.mrb[17].mxu0 }
 0x4b7   :  { %v577_v55 = vpop.f32.mrb[18].mxu0 }
 0x4b8   :  { %v1280_v56 = vpop.f32.mrb[19].mxu0 }
 0x4ce   :  { %v703_v57 = vpop.f32.mrb[20].mxu0 }
 0x4cf   :  { %v1291_v58 = vpop.f32.mrb[21].mxu0 }
 0x4d0   :  { %v706_v59 = vpop.f32.mrb[22].mxu0 }
 0x4d1   :  { %v1292_v60 = vpop.f32.mrb[23].mxu0 }
 0x4d6   :  { %v815_v61 = vpop.f32.mrb[24].mxu0 }
 0x4d7   :  { %v1360_v63 = vpack.i.bf16 %v815_v61, %v350_v45  ;;  %v1303_v1 = vpop.f32.mrb[25].mxu0 }
 0x4d8   :  { %v818_v2 = vpop.f32.mrb[26].mxu0 }
 0x4d9   :  { %1361 = vrot.lane.b32.xlu1 %v1360_v63, %s1534_s17  ;;  %v1304_v14 = vpop.f32.mrb[27].mxu0 }
 0x4de   :  { %v927_v4 = vpop.f32.mrb[28].mxu0 }
 0x4df   :  { %v1365_v5 = vpack.i.bf16 %v927_v4, %v462_v49  ;;  %v1315_v6 = vpop.f32.mrb[29].mxu0 }
 0x4e0   :  { %v930_v7 = vpop.f32.mrb[30].mxu0 }
 0x4e1   :  { %1366 = vrot.lane.b32.xlu1 %v1365_v5, %s1548_s28  ;;  %v1316_v8 = vpop.f32.mrb[31].mxu0 }
 0x4e6   :  { %v1039_v9 = vpop.f32.mrb[32].mxu0 }
 0x4e7   :  { %v1370_v10 = vpack.i.bf16 %v1039_v9, %v574_v53  ;;  %v1327_v12 = vpop.f32.mrb[33].mxu0 }
 0x4e8   :  { %v1042_v13 = vpop.f32.mrb[34].mxu0 }
 0x4e9   :  { %1371 = vrot.lane.b32.xlu0 %v1370_v10, %s1549_s16  ;;  %v1328_v15 = vpop.f32.mrb[35].mxu0 }
 0x54b   :  { %v1362_v16 = vpop.permute.xlu1 %1361 }
 0x54c   :  { %v1364_v18 = vunpack.i.h.bf16 %v1362_v16  ;;  %v1363_v0 = vunpack.i.l.bf16 %v1362_v16 }
 0x54e   :  { %v1057_v22 = vsel %vm134_vm2, %v703_v57, %v1364_v18  ;;  %v592_v23 = vsel %vm134_vm2, %v237_v42, %v1363_v0 }
 0x553   :  { %v1367_v17 = vpop.permute.xlu1 %1366 }
 0x554   :  { %v1369_v19 = vunpack.i.h.bf16 %v1367_v17  ;;  %v1368_v20 = vunpack.i.l.bf16 %v1367_v17 }
 0x556   :  { %v1058_v26 = vsel %vm593_vm4, %v1057_v22, %v1369_v19  ;;  %v594_v27 = vsel %vm593_vm4, %v592_v23, %v1368_v20 }
 0x55b   :  { %v1372_v21 = vpop.permute.xlu0 %1371 }
 0x55c   :  { %v1374_v24 = vunpack.i.h.bf16 %v1372_v21  ;;  %v1373_v25 = vunpack.i.l.bf16 %v1372_v21 }
 0x55e   :  { %v1059_v28 = vsel %vm595_vm5, %v1058_v26, %v1374_v24  ;;  %v596_v29 = vsel %vm595_vm5, %v594_v27, %v1373_v25 }
 0x55f   :  { %v1060_v30 = vpack.c.bf16 %v1059_v28, %v596_v29 }
 0x561   :  { %1334 = vmatmul.mubr.msk.bf16.vlgmr.msra.gmra.mrb[32].mxu1 %vm82_vm1, %v1060_v30 }
 0x562   :  { %1488 = shalt.err (!%p1485_p0)
}
 0x563   :  { %s1489_s23 = scalar_lea.hbm %s1857_s5, 1024 }
 0x564   :  { %p1490_p1 = scmp.ne.s32.totalorder %s1857_s5, %s1489_s23  ;;  %p1493_p2 = scmp.lt.u32.totalorder %s1489_s23, %s1857_s5 }
 0x566   :  { %p1495_p3 = pnand %p1493_p2, %p1490_p1 }
 0x568   :  { %1498 = shalt.err (!%p1495_p3)
}
 0x569   :  { %1153 = dma.vmem_to_hbm [thread:$0]  %s1148_s19, 1024, %s1857_s5, [#allocation10], %s1533_s1, %s1533_s1, %s1534_s17  }
 0x56a   :  { %v1183_v31 = vld [vmem:[%s1855_s3] ss:$0 sm:$0xff]  ;;  %s1551_s2 = smov [#allocation8]  }
 0x56b   :  { %s1135_s29 = sshll.u32 %s1551_s2, 4  ;;  %s1136_s29 = int_to_ptr.vmem [resolvable:$true] %s1135_s29 }
 0x56c   :  { %s1499_s8 = scalar_lea.vmem %s1136_s29, 256  ;;  %p1504_p5 = scmp.lt.s32.totalorder %s1136_s29, %s1136_s29 }
 0x56d   :  { %p1500_p4 = scmp.ne.s32.totalorder %s1136_s29, %s1499_s8  ;;  %p1505_p6 = scmp.lt.s32.totalorder %s1499_s8, %s1499_s8 }
 0x56f   :  { %p1506_p7 = por %p1505_p6, %p1504_p5 }
 0x571   :  { %p1507_p8 = pnand %p1506_p7, %p1500_p4 }
 0x634   :  { %v1121_v32 = vpop.f32.mrb[32].mxu1 }
 0x635   :  { %v1122_v33 = vadd.f32 %v1183_v31, %v1121_v32  ;;  %v1335_v34 = vpop.f32.mrb[33].mxu1 }
 0x636   :  { %v1124_v35 = vpop.f32.mrb[34].mxu1 }
 0x637   :  { %1128 = vst.msk [vmem:[#allocation8] sm:$0xff] %vm82_vm1, %v1122_v33  ;;  %v1125_v36 = vadd.f32 %v1183_v31, %v1124_v35  ;;  %v1336_v37 = vpop.f32.mrb[35].mxu1 }
 0x639   :  { %1129 = vst.msk [vmem:[#allocation8 + $0x8] sm:$0xff] %vm82_vm1, %v1125_v36 }
 0x63a   :  { %1510 = shalt.err (!%p1507_p8)
}
 0x63b   :  { %s1511_s9 = scalar_lea.hbm %s1856_s4, 256 }
 0x63c   :  { %p1512_p9 = scmp.ne.s32.totalorder %s1856_s4, %s1511_s9  ;;  %p1515_p10 = scmp.lt.u32.totalorder %s1511_s9, %s1856_s4 }
 0x63e   :  { %p1517_p11 = pnand %p1515_p10, %p1512_p9 }
 0x640   :  { %1520 = shalt.err (!%p1517_p11)
}
 0x641   :  { %1141 = dma.vmem_to_hbm [thread:$0]  %s1136_s29, 256, %s1856_s4, [#allocation4], %s1533_s1, %s1533_s1, %s1534_s17  }
 0x642   :  { %1525 = dma.done.wait [#allocation4], 256  }
 0x643   :  { %1526 = vsyncadd [#allocation4], 4294967040 }
 0x644   :  { %1527 = dma.done.wait [#allocation10], 1024  }
 0x645   :  { %1528 = vsyncadd [#allocation10], 4294966272 }
 0x646   :  { %1160 = vsyncpa [#allocation3], 1 }
 0x647   :  { %1161 = vsyncpa [#allocation6], 1 }
 0x648   :  { %1162 = vsyncpa [#allocation4], 1 }
 0x649   :  { %1163 = vsyncpa [#allocation10], 1 }

</bundles_post_ra>
